<compile_context>
chip_gen: v6e
topology: v6e:2x2x1
jax: 0.10.0
libtpu: 0.0.40
codegen_flags: <defaults>
</compile_context>

<pallas_src>
import functools

import jax
import jax.numpy as jnp
from jax.experimental import pallas as pl
from jax.experimental.pallas import tpu as pltpu


def _cdiv(a: int, b: int) -> int:
    return -(-a // b)


def _entropy_kernel(x_ref, out_ref, acc_ref, *, tau_inv, apply_tau):
    """One (tile_rows, K) block: add the sum of per-row entropies to acc_ref.

    x_ref   : (tile_rows, K) VMEM tile of logits.
    out_ref : (1, 8, 128) VMEM output block per core-split (broadcast scalar,
              written only on the last reduction step).
    acc_ref : (1, 1) f32 SMEM scalar accumulator (persists across grid steps).
    """
    i = pl.program_id(1)          # row-tile reduction axis ("arbitrary")

    @pl.when(i == 0)
    def _init():
        acc_ref[0, 0] = jnp.float32(0.0)

    # Numerically stable, algebraically simplified entropy:
    #   H_row = log(sum_k e^{s_k}) - (sum_k s_k e^{s_k}) / (sum_k e^{s_k})
    # with s = x / tau - max(x / tau).
    x = x_ref[...].astype(jnp.float32)
    if apply_tau:                                        # trace-time branch
        x = x * tau_inv
    m = jnp.max(x, axis=-1, keepdims=True)
    shifted = x - m
    ex = jnp.exp(shifted)
    denom = jnp.sum(ex, axis=-1, keepdims=True)          # (tile_rows, 1)
    s1 = jnp.sum(ex * shifted, axis=-1, keepdims=True)   # (tile_rows, 1)
    h = jnp.log(denom) - s1 / denom                      # (tile_rows, 1)

    # Padded (all-zero) rows contribute exactly log(K); corrected in wrapper,
    # so no per-step masking is needed here.
    acc_ref[0, 0] = acc_ref[0, 0] + jnp.sum(h)

    @pl.when(i == pl.num_programs(1) - 1)
    def _finalize():
        out_ref[...] = jnp.full(out_ref.shape, acc_ref[0, 0],
                                dtype=out_ref.dtype)


def _device_kind() -> str:
    try:
        return jax.devices()[0].device_kind.lower()
    except Exception:  # pragma: no cover
        return ""


def entropy_reg(s_logits: jax.Array, tau: float = 1.0,
                num_core_splits=None) -> jax.Array:
    """Pallas equivalent of EntropyReg.forward.

    Args:
        s_logits: logits of shape [T, B, K] (f32 or bf16).
        tau: softmax temperature.
        num_core_splits: leading "parallel" grid size; None -> auto
            (2 on v7x, 1 on single-TensorCore chips).

    Returns:
        Scalar f32 array: mean over (T, B) of the softmax entropy over K.
    """
    T, B, K = s_logits.shape
    rows = T * B
    x2d = s_logits.reshape(rows, K)

    kind = _device_kind()
    is_v7 = ("v7" in kind) or ("tpu7" in kind)
    if num_core_splits is None:
        num_core_splits = 2 if is_v7 else 1

    # --- Row-tile sizing ----------------------------------------------------
    itemsize = jnp.dtype(x2d.dtype).itemsize
    row_align = 8 if itemsize >= 4 else 16          # bf16 packs (16, 128)
    bytes_per_row = max(K * itemsize, 1)
    # ~2 MiB blocks (4 MiB on v7x) keep the DMA pipeline well ahead of the
    # ~0.35 us per-grid-step overhead; 2x double-buffered stays small vs VMEM.
    target_block_bytes = (4 << 20) if is_v7 else (2 << 20)
    cap_rows = max(row_align, target_block_bytes // bytes_per_row)
    cap_rows = max(row_align, (cap_rows // row_align) * row_align)

    rows_per_split = _cdiv(rows, num_core_splits)
    tile_rows = min(cap_rows, _cdiv(rows_per_split, row_align) * row_align)
    num_row_tiles = _cdiv(rows, num_core_splits * tile_rows)
    rows_padded = num_core_splits * num_row_tiles * tile_rows
    if rows_padded != rows:
        # Zero padding is safe: each padded row contributes exactly log(K)
        # under the stable formula, corrected for exactly below.
        x2d = jnp.pad(x2d, ((0, rows_padded - rows), (0, 0)))

    # TODO(synk): add a K-tiled (online max/sum) path for vocab-scale K and a
    # lane-packing path for K < 128; both are no-ops for typical class counts.

    block_bytes = tile_rows * K * itemsize
    vmem_limit_bytes = int(min(48 << 20,
                               max(32 << 20, 2 * block_bytes + (8 << 20))))

    kernel = functools.partial(
        _entropy_kernel,
        tau_inv=float(1.0 / tau),
        apply_tau=(float(tau) != 1.0),
    )

    out = pl.pallas_call(
        kernel,
        out_shape=jax.ShapeDtypeStruct((num_core_splits, 8, 128), jnp.float32),
        grid_spec=pltpu.PrefetchScalarGridSpec(
            num_scalar_prefetch=0,
            grid=(num_core_splits, num_row_tiles),
            in_specs=[pl.BlockSpec(
                (tile_rows, K),
                lambda c, i, nt=num_row_tiles: (c * nt + i, 0))],
            out_specs=pl.BlockSpec((1, 8, 128), lambda c, i: (c, 0, 0)),
            scratch_shapes=[pltpu.SMEM((1, 1), jnp.float32)],
        ),
        compiler_params=pltpu.CompilerParams(
            dimension_semantics=("parallel", "arbitrary"),
            vmem_limit_bytes=vmem_limit_bytes),
    )(x2d)

    # One partial sum per core-split (broadcast over its (8,128) block).
    total = out[:, 0, 0].sum()
    n_pad = rows_padded - rows
    if n_pad:
        total = total - jnp.float32(n_pad) * jnp.log(jnp.float32(K))
    return total / rows


def _reference(s_logits, tau):
    x = s_logits.astype(jnp.float32) / tau
    log_prob = jax.nn.log_softmax(x, axis=-1)
    prob = jnp.exp(log_prob)
    entropy = -jnp.sum(prob * log_prob, axis=-1)
    return jnp.mean(entropy)


if __name__ == "__main__":
    key = jax.random.PRNGKey(0)

    # Case 1: small shape consistent with [T, B, K]: T=8, B=2, K=32, tau=2.
    T, B, K = 8, 2, 32
    tau = 2.0
    k1, k2 = jax.random.split(key)
    s_logits = jax.random.normal(k1, (T, B, K), dtype=jnp.float32) * 3.0
    out = jax.block_until_ready(entropy_reg(s_logits, tau=tau))
    ref = _reference(s_logits, tau)
    assert jnp.allclose(out, ref, atol=1e-5, rtol=1e-5), (out, ref)

    # Case 2: ragged row count (T*B not a multiple of 8) exercises the
    # zero-pad + exact log(K) correction path; tau=1 exercises the skip-mul path.
    T2, B2, K2 = 25, 3, 32
    s_logits2 = jax.random.normal(k2, (T2, B2, K2), dtype=jnp.float32) * 3.0
    out2 = jax.block_until_ready(entropy_reg(s_logits2, tau=1.0))
    ref2 = _reference(s_logits2, 1.0)
    assert jnp.allclose(out2, ref2, atol=1e-5, rtol=1e-5), (out2, ref2)

    print("KERNEL_OK")
</pallas_src>

<mosaic_0001>
module attributes {stable_mosaic.version = 11 : i64} {
  func.func @_entropy_kernel(%arg0: i32, %arg1: i32, %arg2: memref<16x32xf32, #tpu.memory_space<vmem>>, %arg3: memref<1x8x128xf32, #tpu.memory_space<vmem>>, %arg4: memref<1x1xf32, #tpu.memory_space<smem>>) attributes {dimension_semantics = [#tpu.dimension_semantics<parallel>, #tpu.dimension_semantics<arbitrary>], iteration_bounds = array<i64: 1, 1>, scalar_prefetch = 0 : i64, scratch_operands = 1 : i64, tpu.core_type = #tpu.core_type<tc>, window_params = [{transform_indices = @transform_0, window_bounds = array<i64: 16, 32>}, {transform_indices = @transform_1, window_bounds = array<i64: 1, 8, 128>}]} {
    %c0_i32 = arith.constant 0 : i32
    %0 = arith.cmpi eq, %arg1, %c0_i32 : i32
    %1 = arith.extui %0 : i1 to i32
    %c0_i32_0 = arith.constant 0 : i32
    %2 = arith.cmpi ne, %1, %c0_i32_0 : i32
    scf.if %2 {
      %cst_12 = arith.constant 0.000000e+00 : f32
      %c0_13 = arith.constant 0 : index
      %c0_14 = arith.constant 0 : index
      %29 = memref.load %arg4[%c0_13, %c0_14] : memref<1x1xf32, #tpu.memory_space<smem>>
      memref.store %cst_12, %arg4[%c0_13, %c0_14] : memref<1x1xf32, #tpu.memory_space<smem>>
    } else {
    }
    %c0 = arith.constant 0 : index
    %c0_1 = arith.constant 0 : index
    %3 = vector.load %arg2[%c0, %c0_1] : memref<16x32xf32, #tpu.memory_space<vmem>>, vector<16x32xf32>
    %cst = arith.constant 5.000000e-01 : f32
    %4 = vector.broadcast %cst : f32 to vector<16x32xf32>
    %5 = arith.mulf %3, %4 : vector<16x32xf32>
    %cst_2 = arith.constant dense<0xFF800000> : vector<16xf32>
    %6 = vector.multi_reduction <maximumf>, %5, %cst_2 [1] : vector<16x32xf32> to vector<16xf32>
    %7 = vector.shape_cast %6 : vector<16xf32> to vector<16x1xf32>
    %8 = vector.broadcast %7 : vector<16x1xf32> to vector<16x32xf32>
    %9 = arith.subf %5, %8 : vector<16x32xf32>
    %10 = math.exp %9 : vector<16x32xf32>
    %cst_3 = arith.constant dense<0.000000e+00> : vector<16xf32>
    %11 = vector.multi_reduction <add>, %10, %cst_3 [1] : vector<16x32xf32> to vector<16xf32>
    %12 = vector.shape_cast %11 : vector<16xf32> to vector<16x1xf32>
    %13 = arith.mulf %10, %9 : vector<16x32xf32>
    %cst_4 = arith.constant dense<0.000000e+00> : vector<16xf32>
    %14 = vector.multi_reduction <add>, %13, %cst_4 [1] : vector<16x32xf32> to vector<16xf32>
    %15 = vector.shape_cast %14 : vector<16xf32> to vector<16x1xf32>
    %16 = math.log %12 : vector<16x1xf32>
    %17 = arith.divf %15, %12 : vector<16x1xf32>
    %18 = arith.subf %16, %17 : vector<16x1xf32>
    %c0_5 = arith.constant 0 : index
    %c0_6 = arith.constant 0 : index
    %19 = memref.load %arg4[%c0_5, %c0_6] : memref<1x1xf32, #tpu.memory_space<smem>>
    %20 = vector.shape_cast %18 : vector<16x1xf32> to vector<1x16x1xf32>
    %cst_7 = arith.constant dense<0.000000e+00> : vector<1xf32>
    %21 = vector.multi_reduction <add>, %20, %cst_7 [1, 2] : vector<1x16x1xf32> to vector<1xf32>
    %22 = vector.shape_cast %21 : vector<1xf32> to vector<1x1x1xf32>
    %23 = vector.extract %22[0, 0, 0] : f32 from vector<1x1x1xf32>
    %24 = arith.addf %19, %23 : f32
    %c0_8 = arith.constant 0 : index
    %c0_9 = arith.constant 0 : index
    %25 = memref.load %arg4[%c0_8, %c0_9] : memref<1x1xf32, #tpu.memory_space<smem>>
    memref.store %24, %arg4[%c0_8, %c0_9] : memref<1x1xf32, #tpu.memory_space<smem>>
    %c0_i32_10 = arith.constant 0 : i32
    %26 = arith.cmpi eq, %arg1, %c0_i32_10 : i32
    %27 = arith.extui %26 : i1 to i32
    %c0_i32_11 = arith.constant 0 : i32
    %28 = arith.cmpi ne, %27, %c0_i32_11 : i32
    scf.if %28 {
      %c0_12 = arith.constant 0 : index
      %c0_13 = arith.constant 0 : index
      %29 = memref.load %arg4[%c0_12, %c0_13] : memref<1x1xf32, #tpu.memory_space<smem>>
      %30 = vector.broadcast %29 : f32 to vector<1x8x128xf32>
      %c0_14 = arith.constant 0 : index
      %c0_15 = arith.constant 0 : index
      %c0_16 = arith.constant 0 : index
      %31 = vector.load %arg3[%c0_14, %c0_15, %c0_16] : memref<1x8x128xf32, #tpu.memory_space<vmem>>, vector<1x8x128xf32>
      tpu.vector_store %arg3[%c0_14, %c0_15, %c0_16], %30 {strides = array<i32>} : memref<1x8x128xf32, #tpu.memory_space<vmem>>, vector<1x8x128xf32>,
    } else {
    }
    return
  }
  func.func @transform_0(%arg0: i32, %arg1: i32) -> (i32, i32) {
    %c1_i32 = arith.constant 1 : i32
    %0 = arith.muli %arg0, %c1_i32 : i32
    %1 = arith.addi %0, %arg1 : i32
    %c0_i32 = arith.constant 0 : i32
    %c0_i32_0 = arith.constant 0 : i32
    return %1, %c0_i32 : i32, i32
  }
  func.func @transform_1(%arg0: i32, %arg1: i32) -> (i32, i32, i32) {
    %c0_i32 = arith.constant 0 : i32
    %c0_i32_0 = arith.constant 0 : i32
    %c0_i32_1 = arith.constant 0 : i32
    return %arg0, %c0_i32, %c0_i32_0 : i32, i32, i32
  }
}

</mosaic_0001>

<bundles_post_ra>
// kernel: tpu_custom_call.1
= control target key start
LH: loop header
LB: loop body
LE: loop exit
PB: predicated region body
PF: predicated region fallthrough
CT: control target
= control target key end

     0   :  { %6 = vsyncpa [#allocation4], 0  ;;  %s202_s0 = inlined_call_operand.hbm [shape: f32[16,32], index: 0, kind: input, shape index: {}]   ;;  %s203_s1 = inlined_call_operand.hbm [shape: f32[1,8,128], index: 1, kind: output, shape index: {}]  }
   0x1   :  { %7 = vsyncpa [#allocation5], 0  ;;  %s176_s6 = smov [#allocation3]  }
   0x2   :  { %s17_s7 = sshll.u32 %s176_s6, 4  ;;  %s18_s7 = int_to_ptr.vmem [resolvable:$true] %s17_s7 }
   0x3   :  { %s140_s8 = scalar_lea.vmem %s18_s7, 256  ;;  %p145_p1 = scmp.lt.s32.totalorder %s18_s7, %s18_s7 }
   0x4   :  { %p141_p0 = scmp.ne.s32.totalorder %s18_s7, %s140_s8  ;;  %p146_p2 = scmp.lt.s32.totalorder %s140_s8, %s140_s8 }
   0x6   :  { %p147_p3 = por %p146_p2, %p145_p1 }
   0x8   :  { %p148_p4 = pnand %p147_p3, %p141_p0 }
   0xa   :  { %151 = shalt.err (!%p148_p4)
}
   0xb   :  { %s177_s9 = smov 128   ;;  %s178_s10 = smov 8  }
   0xc   :  { %23 = dma.hbm_to_vmem [thread:$0]  %s202_s0, 256, %s18_s7, [#allocation4], %s177_s9, %s177_s9, %s178_s10  }
   0xd   :  { %172 = dma.done.wait [#allocation4], 256  }
   0xe   :  { %173 = vsyncadd [#allocation4], 4294967040  ;;  %v35_v0 = vld [vmem:[#allocation3] sm:$0xff]  ;;  %vm39_vm0 = vcmask 261120   ;;  %v36_v1 = vld [vmem:[#allocation3 + $0x8] sm:$0xff]  ;;  %vm77_vm1 = vcmask 7168  }
   0xf   :  { %v37_v2 = vmul.f32 0.5, %v35_v0  ;;  %v38_v3 = vmul.f32 0.5, %v36_v1  ;;  %s179_s0 = smov [#allocation6]  }
  0x10   :  { %s105_s13 = sshll.u32 %s179_s0, 4  ;;  %s106_s13 = int_to_ptr.vmem [resolvable:$true] %s105_s13 }
  0x11   :  { %v40_v4 = vsel %vm39_vm0, %v37_v2, -inf  ;;  %v43_v5 = vsel %vm39_vm0, %v38_v3, -inf  ;;  %s152_s15 = scalar_lea.vmem %s106_s13, 128  ;;  %p157_p6 = scmp.lt.s32.totalorder %s106_s13, %s106_s13 }
  0x12   :  { %41 = vmax.xlane.f32.xlu0 %v40_v4  ;;  %p153_p5 = scmp.ne.s32.totalorder %s106_s13, %s152_s15  ;;  %p158_p7 = scmp.lt.s32.totalorder %s152_s15, %s152_s15 }
  0x14   :  { %p159_p8 = por %p158_p7, %p157_p6 }
  0x16   :  { %44 = vmax.xlane.f32.xlu0 %v43_v5  ;;  %p160_p9 = pnand %p159_p8, %p153_p5 }
  0x9b   :  { %v42_v6 = vpop.xlane.xlu0 %41 }
  0x9c   :  { %v46_v7 = vsub.f32 %v37_v2, %v42_v6 }
  0x9e   :  { %v48_v8 = vmul.f32 1.442695, %v46_v7 }
  0x9f   :  { %v45_v9 = vpop.xlane.xlu0 %44 }
  0xa0   :  { %120 = vpow2.f32 %v48_v8  ;;  %v47_v10 = vsub.f32 %v38_v3, %v45_v9 }
  0xa2   :  { %v50_v11 = vmul.f32 1.442695, %v47_v10 }
  0xa4   :  { %122 = vpow2.f32 %v50_v11 }
  0xad   :  { %v121_v12 = vpop.eup %120 }
  0xae   :  { %v52_v13 = vsel %vm39_vm0, %v121_v12, 0.0  ;;  %v58_v14 = vmul.f32 %v121_v12, %v46_v7 }
  0xaf   :  { %53 = vadd.xlane.f32.xlu1 %v52_v13 }
  0xb0   :  { %v60_v15 = vsel %vm39_vm0, %v58_v14, 0.0 }
  0xb1   :  { %v123_v16 = vpop.eup %122  ;;  %61 = vadd.xlane.f32.xlu0 %v60_v15 }
  0xb2   :  { %v55_v17 = vsel %vm39_vm0, %v123_v16, 0.0  ;;  %v59_v18 = vmul.f32 %v123_v16, %v47_v10 }
  0xb3   :  { %56 = vadd.xlane.f32.xlu1 %v55_v17 }
  0xb4   :  { %v63_v19 = vsel %vm39_vm0, %v59_v18, 0.0 }
  0xb7   :  { %64 = vadd.xlane.f32.xlu1 %v63_v19 }
 0x138   :  { %v54_v20 = vpop.xlane.xlu1 %53 }
 0x139   :  { %124 = vlog2.f32 %v54_v20 }
 0x13a   :  { %126 = vrcp.f32 %v54_v20  ;;  %v62_v24 = vpop.xlane.xlu0 %61 }
 0x13c   :  { %v57_v21 = vpop.xlane.xlu1 %56 }
 0x13d   :  { %128 = vlog2.f32 %v57_v21 }
 0x13e   :  { %130 = vrcp.f32 %v57_v21 }
 0x140   :  { %v65_v30 = vpop.xlane.xlu1 %64 }
 0x146   :  { %v125_v22 = vpop.eup %124 }
 0x147   :  { %v127_v23 = vpop.eup %126  ;;  %v67_v25 = vmul.f32 0.6931472, %v125_v22 }
 0x148   :  { %v71_v26 = vmul.f32 %v127_v23, %v62_v24 }
 0x14a   :  { %v129_v27 = vpop.eup %128  ;;  %v74_v31 = vsub.f32 %v67_v25, %v71_v26 }
 0x14b   :  { %v131_v28 = vpop.eup %130  ;;  %v69_v29 = vmul.f32 0.6931472, %v129_v27 }
 0x14c   :  { %v73_v32 = vmul.f32 %v131_v28, %v65_v30  ;;  %v78_v34 = vsel %vm77_vm1, %v74_v31, 0.0 }
 0x14e   :  { %v75_v33 = vsub.f32 %v69_v29, %v73_v32 }
 0x150   :  { %v79_v35 = vsel %vm77_vm1, %v75_v33, 0.0 }
 0x151   :  { %v80_v36 = vadd.f32 %v79_v35, %v78_v34 }
 0x153   :  { %81 = vadd.xlane.f32.xlu0 %v80_v36 }
 0x1dc   :  { %v82_v37 = vpop.xlane.xlu0 %81 }
 0x1dd   :  { %v83_v38 = vrot.slane %v82_v37, 4 }
 0x1df   :  { %v84_v39 = vadd.f32 %v83_v38, %v82_v37 }
 0x1e1   :  { %v85_v40 = vrot.slane %v84_v39, 2 }
 0x1e3   :  { %v86_v41 = vadd.f32 %v85_v40, %v84_v39 }
 0x1e5   :  { %v87_v42 = vrot.slane %v86_v41, 1 }
 0x1e7   :  { %v88_v43 = vadd.f32 %v87_v42, %v86_v41 }
 0x1e9   :  { %114 = vpush %v88_v43 }
 0x21a   :  { %s115_s14 = spop %114 }
 0x21b   :  { %v97_v44 = vstv %s115_s14 }
 0x21c   :  { %98 = vst [vmem:[#allocation6] sm:$0xff] %v97_v44 }
 0x21d   :  { %163 = shalt.err (!%p160_p9)
}
 0x21e   :  { %108 = dma.vmem_to_hbm [thread:$0]  %s106_s13, 128, %s203_s1, [#allocation5]  }
 0x21f   :  { %174 = dma.done.wait [#allocation5], 128  }
 0x220   :  { %175 = vsyncadd [#allocation5], 4294967168 }
 0x221   :  { %112 = vsyncpa [#allocation4], 1 }
 0x222   :  { %113 = vsyncpa [#allocation5], 1 }

</bundles_post_ra>
